<compile_context>
chip_gen: v6e
topology: v6e:2x2x1
jax: 0.10.0
libtpu: 0.0.40
codegen_flags: <defaults>
</compile_context>

<pallas_src>
import functools

import jax
import jax.numpy as jnp
import numpy as np
from jax.experimental import pallas as pl
from jax.experimental.pallas import tpu as pltpu

EPS = 1e-5

_TILE_BUDGET_BYTES = 3 << 19            # ~1.5 MiB (f32) preferred x tile
_MAX_WHOLE_ROW_TILE_BYTES = 3 << 20     # allow a stretched 8-row whole-HW tile up to 3 MiB
_SPLIT_HW_TILE = 16384                  # lanes per HW chunk in the split (large-HW) path
_WB_FULL_MAX_ROWS = 1024                # keep full weight/bias resident if this small
_VMEM_LIMIT_BYTES = 32 * 1024 * 1024


def _round_up(x, m):
    return ((x + m - 1) // m) * m


def _pick_row_tile(bc, hwp):
    """Rows per block: multiple of 8, fits VMEM budget, ~8 grid steps, even #tiles."""
    if bc < 8:
        return bc                                   # block == full dim (allowed)
    row_bytes = hwp * 4
    fit = max(8, ((_TILE_BUDGET_BYTES // row_bytes) // 8) * 8)
    cap = max(8, ((bc // 8) // 8) * 8)              # aim for ~8 row tiles
    tr = min(fit, cap, _round_up(bc, 8))
    nb = pl.cdiv(bc, tr)
    if nb > 1 and nb % 2 == 1:                      # even tile count -> v7x 2-core balance
        for cand in (tr - 8, tr + 8):
            if 8 <= cand <= fit and pl.cdiv(bc, cand) % 2 == 0:
                tr = cand
                break
    return tr


# ----------------------------------------------------------------------------
# Main path: one block = (tile_rows, HWp); each row is one instance-channel.
# ----------------------------------------------------------------------------
def _adain_rows_kernel(x_ref, w_ref, b_ref, o_ref, *, eps, inv_hw, wb_full):
    tr = x_ref.shape[0]
    xf = x_ref[...].astype(jnp.float32)                      # (TR, HWp) f32
    if wb_full:                                              # full w/b resident in VMEM
        r0 = pl.program_id(0) * tr
        if tr % 8 == 0:
            r0 = pl.multiple_of(r0, 8)
        w = w_ref[pl.ds(r0, tr), :]
        b = b_ref[pl.ds(r0, tr), :]
    else:
        w = w_ref[...]
        b = b_ref[...]
    s1 = jnp.sum(xf, axis=1, keepdims=True)                  # (TR, 1) lane reduce
    s2 = jnp.sum(xf * xf, axis=1, keepdims=True)
    mu = s1 * inv_hw
    var = jnp.maximum(s2 * inv_hw - mu * mu, 0.0)            # biased var, clamp cancellation
    scale = w * jax.lax.rsqrt(var + eps)
    shift = b - mu * scale
    o_ref[...] = (xf * scale + shift).astype(o_ref.dtype)


def _adain_whole_rows(x2, w2, b2, *, eps):
    bc, hw = x2.shape
    hwp = _round_up(hw, 128)
    xp = x2 if hwp == hw else jnp.pad(x2, ((0, 0), (0, hwp - hw)))

    tr = _pick_row_tile(bc, hwp)
    nb = pl.cdiv(bc, tr)
    bcp = nb * tr
    if bcp != bc:
        w2 = jnp.pad(w2, ((0, bcp - bc), (0, 0)))
        b2 = jnp.pad(b2, ((0, bcp - bc), (0, 0)))

    wb_full = (nb > 1) and (bcp <= _WB_FULL_MAX_ROWS)
    if wb_full:
        wb_spec = pl.BlockSpec((bcp, 1), lambda i: (0, 0))   # loaded once, reused
    else:
        wb_spec = pl.BlockSpec((tr, 1), lambda i: (i, 0))

    out = pl.pallas_call(
        functools.partial(_adain_rows_kernel, eps=float(eps),
                          inv_hw=1.0 / float(hw), wb_full=wb_full),
        out_shape=jax.ShapeDtypeStruct((bc, hwp), x2.dtype),
        grid=(nb,),
        in_specs=[pl.BlockSpec((tr, hwp), lambda i: (i, 0)), wb_spec, wb_spec],
        out_specs=pl.BlockSpec((tr, hwp), lambda i: (i, 0)),
        compiler_params=pltpu.CompilerParams(
            dimension_semantics=("parallel",),
            vmem_limit_bytes=_VMEM_LIMIT_BYTES),
    )(xp, w2, b2)
    return out[:, :hw] if hwp != hw else out


# ----------------------------------------------------------------------------
# Large-H*W path: phase 1 accumulates sum / sumsq over HW chunks (reduction axis
# last), phase 2 applies the folded affine.
# ----------------------------------------------------------------------------
def _adain_stats_kernel(x_ref, w_ref, b_ref, scale_ref, shift_ref,
                        s1_ref, s2_ref, *, eps, inv_hw):
    j = pl.program_id(1)

    @pl.when(j == 0)
    def _():
        s1_ref[...] = jnp.zeros_like(s1_ref)
        s2_ref[...] = jnp.zeros_like(s2_ref)

    xf = x_ref[...].astype(jnp.float32)
    s1_ref[...] += jnp.sum(xf, axis=1, keepdims=True)
    s2_ref[...] += jnp.sum(xf * xf, axis=1, keepdims=True)

    @pl.when(j == pl.num_programs(1) - 1)
    def _():
        mu = s1_ref[...] * inv_hw
        var = jnp.maximum(s2_ref[...] * inv_hw - mu * mu, 0.0)
        scale = w_ref[...] * jax.lax.rsqrt(var + eps)
        scale_ref[...] = scale
        shift_ref[...] = b_ref[...] - mu * scale


def _adain_apply_kernel(x_ref, scale_ref, shift_ref, o_ref):
    xf = x_ref[...].astype(jnp.float32)
    o_ref[...] = (xf * scale_ref[...] + shift_ref[...]).astype(o_ref.dtype)


def _adain_split_hw(x2, w2, b2, *, eps, thw=_SPLIT_HW_TILE):
    bc, hw = x2.shape
    thw = min(thw, _round_up(hw, 128))
    hwp = _round_up(hw, thw)                     # zero padding is stats-neutral
    xp = x2 if hwp == hw else jnp.pad(x2, ((0, 0), (0, hwp - hw)))
    nhw = hwp // thw

    if bc < 8:
        tr = bc
    else:
        tr = max(8, ((_TILE_BUDGET_BYTES // (thw * 4)) // 8) * 8)
        tr = min(tr, _round_up(bc, 8))
    nr = pl.cdiv(bc, tr)
    inv_hw = 1.0 / float(hw)

    scale, shift = pl.pallas_call(
        functools.partial(_adain_stats_kernel, eps=float(eps), inv_hw=inv_hw),
        out_shape=(jax.ShapeDtypeStruct((bc, 1), jnp.float32),
                   jax.ShapeDtypeStruct((bc, 1), jnp.float32)),
        grid=(nr, nhw),
        in_specs=[pl.BlockSpec((tr, thw), lambda i, j: (i, j)),
                  pl.BlockSpec((tr, 1), lambda i, j: (i, 0)),
                  pl.BlockSpec((tr, 1), lambda i, j: (i, 0))],
        out_specs=(pl.BlockSpec((tr, 1), lambda i, j: (i, 0)),
                   pl.BlockSpec((tr, 1), lambda i, j: (i, 0))),
        scratch_shapes=[pltpu.VMEM((tr, 1), jnp.float32),
                        pltpu.VMEM((tr, 1), jnp.float32)],
        compiler_params=pltpu.CompilerParams(
            dimension_semantics=("parallel", "arbitrary"),
            vmem_limit_bytes=_VMEM_LIMIT_BYTES),
    )(xp, w2, b2)

    out = pl.pallas_call(
        _adain_apply_kernel,
        out_shape=jax.ShapeDtypeStruct((bc, hwp), x2.dtype),
        grid=(nr, nhw),
        in_specs=[pl.BlockSpec((tr, thw), lambda i, j: (i, j)),
                  pl.BlockSpec((tr, 1), lambda i, j: (i, 0)),
                  pl.BlockSpec((tr, 1), lambda i, j: (i, 0))],
        out_specs=pl.BlockSpec((tr, thw), lambda i, j: (i, j)),
        compiler_params=pltpu.CompilerParams(
            dimension_semantics=("parallel", "parallel"),
            vmem_limit_bytes=_VMEM_LIMIT_BYTES),
    )(xp, scale, shift)
    return out[:, :hw] if hwp != hw else out


# ----------------------------------------------------------------------------
# Public wrapper.
# ----------------------------------------------------------------------------
def adaptive_instance_norm_2d(x, weight, bias, *, eps=EPS):
    """x: (B, C, H, W); weight, bias: anything reshapeable to (B*C,). I/O in x.dtype."""
    B, C, H, W = x.shape
    BC, HW = B * C, H * W

    x2 = x.reshape(BC, HW)                                   # free view of contiguous NCHW
    w2 = jnp.asarray(weight).reshape(BC, 1).astype(jnp.float32)
    b2 = jnp.asarray(bias).reshape(BC, 1).astype(jnp.float32)

    if 8 * _round_up(HW, 128) * 4 <= _MAX_WHOLE_ROW_TILE_BYTES:
        out = _adain_whole_rows(x2, w2, b2, eps=eps)
    else:
        out = _adain_split_hw(x2, w2, b2, eps=eps)
    return out.reshape(B, C, H, W)


# ----------------------------------------------------------------------------
# Pure-JAX reference (mirrors F.batch_norm(training=True) on (1, B*C, H, W)).
# ----------------------------------------------------------------------------
def adain_ref(x, weight, bias, eps=EPS):
    B, C, H, W = x.shape
    xr = x.reshape(1, B * C, H, W).astype(jnp.float32)
    mu = jnp.mean(xr, axis=(0, 2, 3), keepdims=True)
    var = jnp.mean((xr - mu) ** 2, axis=(0, 2, 3), keepdims=True)
    w = jnp.asarray(weight).reshape(1, B * C, 1, 1).astype(jnp.float32)
    b = jnp.asarray(bias).reshape(1, B * C, 1, 1).astype(jnp.float32)
    out = (xr - mu) / jnp.sqrt(var + eps) * w + b
    return out.reshape(B, C, H, W)


if __name__ == "__main__":
    key = jax.random.PRNGKey(0)
    kx, kw, kb = jax.random.split(key, 3)

    # PyTorch-style NCHW input; AdaIN weight/bias are per-(batch, channel).
    B, C, H, W = 2, 4, 16, 16
    x = jax.random.normal(kx, (B, C, H, W), jnp.float32)
    weight = 1.0 + 0.5 * jax.random.normal(kw, (B, C), jnp.float32)
    bias = 0.1 * jax.random.normal(kb, (B, C), jnp.float32)

    out = jax.block_until_ready(adaptive_instance_norm_2d(x, weight, bias))
    ref = jax.block_until_ready(adain_ref(x, weight, bias))
    assert out.dtype == x.dtype
    assert np.all(np.isfinite(np.asarray(out)))
    np.testing.assert_allclose(np.asarray(out), np.asarray(ref), rtol=1e-4, atol=1e-4)

    # bf16 I/O + non-lane-aligned spatial (14x14): in-kernel casts + lane padding.
    xb = jax.random.normal(kx, (2, 4, 14, 14), jnp.float32).astype(jnp.bfloat16)
    outb = jax.block_until_ready(adaptive_instance_norm_2d(xb, weight, bias))
    refb = adain_ref(xb.astype(jnp.float32), weight, bias)
    assert outb.dtype == jnp.bfloat16
    np.testing.assert_allclose(np.asarray(outb.astype(jnp.float32)),
                               np.asarray(refb), rtol=5e-2, atol=5e-2)

    # Exercise the large-H*W split path on a small shape (forced 128-lane chunks).
    x2 = x.reshape(B * C, H * W)
    w2 = weight.reshape(B * C, 1)
    b2 = bias.reshape(B * C, 1)
    outs = jax.block_until_ready(_adain_split_hw(x2, w2, b2, eps=EPS, thw=128))
    np.testing.assert_allclose(np.asarray(outs.reshape(B, C, H, W)),
                               np.asarray(ref), rtol=1e-4, atol=1e-4)

    print("KERNEL_OK")
</pallas_src>

<mosaic_0001>
module attributes {stable_mosaic.version = 11 : i64} {
  func.func @_adain_rows_kernel(%arg0: i32, %arg1: memref<8x256xf32, #tpu.memory_space<vmem>>, %arg2: memref<8x1xf32, #tpu.memory_space<vmem>>, %arg3: memref<8x1xf32, #tpu.memory_space<vmem>>, %arg4: memref<8x256xf32, #tpu.memory_space<vmem>>) attributes {dimension_semantics = [#tpu.dimension_semantics<parallel>], iteration_bounds = array<i64: 1>, scalar_prefetch = 0 : i64, scratch_operands = 0 : i64, tpu.core_type = #tpu.core_type<tc>, window_params = [{transform_indices = @transform_0, window_bounds = array<i64: 8, 256>}, {transform_indices = @transform_1, window_bounds = array<i64: 8, 1>}, {transform_indices = @transform_2, window_bounds = array<i64: 8, 1>}, {transform_indices = @transform_3, window_bounds = array<i64: 8, 256>}]} {
    %c0 = arith.constant 0 : index
    %c0_0 = arith.constant 0 : index
    %0 = vector.load %arg1[%c0, %c0_0] : memref<8x256xf32, #tpu.memory_space<vmem>>, vector<8x256xf32>
    %c0_1 = arith.constant 0 : index
    %c0_2 = arith.constant 0 : index
    %1 = vector.load %arg2[%c0_1, %c0_2] : memref<8x1xf32, #tpu.memory_space<vmem>>, vector<8x1xf32>
    %c0_3 = arith.constant 0 : index
    %c0_4 = arith.constant 0 : index
    %2 = vector.load %arg3[%c0_3, %c0_4] : memref<8x1xf32, #tpu.memory_space<vmem>>, vector<8x1xf32>
    %cst = arith.constant dense<0.000000e+00> : vector<8xf32>
    %3 = vector.multi_reduction <add>, %0, %cst [1] : vector<8x256xf32> to vector<8xf32>
    %4 = vector.shape_cast %3 : vector<8xf32> to vector<8x1xf32>
    %5 = arith.mulf %0, %0 : vector<8x256xf32>
    %cst_5 = arith.constant dense<0.000000e+00> : vector<8xf32>
    %6 = vector.multi_reduction <add>, %5, %cst_5 [1] : vector<8x256xf32> to vector<8xf32>
    %7 = vector.shape_cast %6 : vector<8xf32> to vector<8x1xf32>
    %cst_6 = arith.constant 3.906250e-03 : f32
    %8 = vector.broadcast %cst_6 : f32 to vector<8x1xf32>
    %9 = arith.mulf %4, %8 : vector<8x1xf32>
    %cst_7 = arith.constant 3.906250e-03 : f32
    %10 = vector.broadcast %cst_7 : f32 to vector<8x1xf32>
    %11 = arith.mulf %7, %10 : vector<8x1xf32>
    %12 = arith.mulf %9, %9 : vector<8x1xf32>
    %13 = arith.subf %11, %12 : vector<8x1xf32>
    %cst_8 = arith.constant 0.000000e+00 : f32
    %14 = vector.broadcast %cst_8 : f32 to vector<8x1xf32>
    %15 = arith.maximumf %13, %14 : vector<8x1xf32>
    %cst_9 = arith.constant 9.99999974E-6 : f32
    %16 = vector.broadcast %cst_9 : f32 to vector<8x1xf32>
    %17 = arith.addf %15, %16 : vector<8x1xf32>
    %18 = math.rsqrt %17 : vector<8x1xf32>
    %19 = arith.mulf %1, %18 : vector<8x1xf32>
    %20 = arith.mulf %9, %19 : vector<8x1xf32>
    %21 = arith.subf %2, %20 : vector<8x1xf32>
    %22 = vector.broadcast %19 : vector<8x1xf32> to vector<8x256xf32>
    %23 = arith.mulf %0, %22 : vector<8x256xf32>
    %24 = vector.broadcast %21 : vector<8x1xf32> to vector<8x256xf32>
    %25 = arith.addf %23, %24 : vector<8x256xf32>
    %c0_10 = arith.constant 0 : index
    %c0_11 = arith.constant 0 : index
    %26 = vector.load %arg4[%c0_10, %c0_11] : memref<8x256xf32, #tpu.memory_space<vmem>>, vector<8x256xf32>
    tpu.vector_store %arg4[%c0_10, %c0_11], %25 {strides = array<i32>} : memref<8x256xf32, #tpu.memory_space<vmem>>, vector<8x256xf32>,
    return
  }
  func.func @transform_0(%arg0: i32) -> (i32, i32) {
    %c0_i32 = arith.constant 0 : i32
    %c0_i32_0 = arith.constant 0 : i32
    return %arg0, %c0_i32 : i32, i32
  }
  func.func @transform_1(%arg0: i32) -> (i32, i32) {
    %c0_i32 = arith.constant 0 : i32
    %c0_i32_0 = arith.constant 0 : i32
    return %arg0, %c0_i32 : i32, i32
  }
  func.func @transform_2(%arg0: i32) -> (i32, i32) {
    %c0_i32 = arith.constant 0 : i32
    %c0_i32_0 = arith.constant 0 : i32
    return %arg0, %c0_i32 : i32, i32
  }
  func.func @transform_3(%arg0: i32) -> (i32, i32) {
    %c0_i32 = arith.constant 0 : i32
    %c0_i32_0 = arith.constant 0 : i32
    return %arg0, %c0_i32 : i32, i32
  }
}

</mosaic_0001>

<bundles_post_ra>
// kernel: tpu_custom_call.1
= control target key start
LH: loop header
LB: loop body
LE: loop exit
PB: predicated region body
PF: predicated region fallthrough
CT: control target
= control target key end

     0   :  { %s132_s0 = inlined_call_operand.vmem [shape: f32[8,256], index: 0, kind: input, shape index: {}]   ;;  %s133_s1 = inlined_call_operand.vmem [shape: f32[8,1], index: 1, kind: input, shape index: {}]   ;;  %s134_s2 = inlined_call_operand.vmem [shape: f32[8,1], index: 2, kind: input, shape index: {}]   ;;  %s135_s3 = inlined_call_operand.hbm [shape: f32[8,256], index: 3, kind: output, shape index: {}]  }
   0x1   :  { %v15_v0 = vld [vmem:[%s132_s0] sm:$0xff]  ;;  %v16_v1 = vld [vmem:[%s132_s0 + $0x8] sm:$0xff] }
   0x2   :  { %8 = vsyncpa [#allocation3], 0  ;;  %v19_v2 = vadd.f32 %v16_v1, %v15_v0  ;;  %v22_v3 = vmul.f32 %v15_v0, %v15_v0  ;;  %v23_v4 = vmul.f32 %v16_v1, %v16_v1  ;;  %v95_v6 = vmov 0   ;;  %v17_v15 = vld [vmem:[%s133_s1] sm:$0xff]  ;;  %s96_s19 = smov [#allocation2]  }
   0x3   :  { %69 = vset.pattern.permute.xlu1 %v95_v6  ;;  %70 = vset.pattern.permute.xlu0 %v95_v6  ;;  %v18_v18 = vld [vmem:[%s134_s2] sm:$0xff]  ;;  %s59_s20 = sshll.u32 %s96_s19, 4  ;;  %s60_s20 = int_to_ptr.vmem [resolvable:$true] %s59_s20 }
   0x4   :  { %20 = vadd.xlane.f32.xlu0 %v19_v2  ;;  %v24_v5 = vadd.f32 %v23_v4, %v22_v3  ;;  %s73_s1 = scalar_lea.vmem %s60_s20, 256  ;;  %p78_p1 = scmp.lt.s32.totalorder %s60_s20, %s60_s20 }
   0x5   :  { %p74_p0 = scmp.ne.s32.totalorder %s60_s20, %s73_s1  ;;  %p79_p2 = scmp.lt.s32.totalorder %s73_s1, %s73_s1 }
   0x7   :  { %p80_p3 = por %p79_p2, %p78_p1 }
   0x8   :  { %25 = vadd.xlane.f32.xlu0 %v24_v5 }
   0x9   :  { %p81_p4 = pnand %p80_p3, %p74_p0 }
  0x8d   :  { %v21_v7 = vpop.xlane.xlu0 %20 }
  0x8e   :  { %v27_v8 = vmul.f32 0.00390625, %v21_v7 }
  0x90   :  { %v29_v10 = vmul.f32 %v27_v8, %v27_v8 }
  0x91   :  { %v26_v9 = vpop.xlane.xlu0 %25 }
  0x92   :  { %v28_v11 = vmul.f32 0.00390625, %v26_v9 }
  0x94   :  { %v30_v12 = vsub.f32 %v28_v11, %v29_v10 }
  0x96   :  { %v31_v13 = vmax.f32 %v30_v12, 0.0 }
  0x98   :  { %v32_v14 = vadd.f32 1e-05, %v31_v13 }
  0x9a   :  { %71 = vrsqrt.f32 %v32_v14 }
  0xa7   :  { %v72_v16 = vpop.eup %71 }
  0xa8   :  { %v34_v17 = vmul.f32 %v72_v16, %v17_v15 }
  0xaa   :  { %39 = vperm.xlu1 %69, %v34_v17   ;;  %v35_v19 = vmul.f32 %v34_v17, %v27_v8 }
  0xac   :  { %v36_v20 = vsub.f32 %v18_v18, %v35_v19 }
  0xae   :  { %46 = vperm.xlu1 %69, %v36_v20  }
 0x125   :  { %v40_v21 = vpop.permute.xlu1 %39 }
 0x126   :  { %v42_v22 = vmul.f32 %v40_v21, %v15_v0  ;;  %v43_v23 = vmul.f32 %v40_v21, %v16_v1 }
 0x129   :  { %v47_v24 = vpop.permute.xlu1 %46 }
 0x12a   :  { %v49_v25 = vadd.f32 %v47_v24, %v42_v22  ;;  %v50_v26 = vadd.f32 %v47_v24, %v43_v23 }
 0x12c   :  { %51 = vst [vmem:[#allocation2] sm:$0xff] %v49_v25  ;;  %52 = vst [vmem:[#allocation2 + $0x8] sm:$0xff] %v50_v26 }
 0x12d   :  { %84 = shalt.err (!%p81_p4)
}
 0x12e   :  { %62 = dma.vmem_to_hbm [thread:$0]  %s60_s20, 256, %s135_s3, [#allocation3]  }
 0x12f   :  { %93 = dma.done.wait [#allocation3], 256  }
 0x130   :  { %94 = vsyncadd [#allocation3], 4294967040 }
 0x131   :  { %66 = vsyncpa [#allocation3], 1 }

</bundles_post_ra>
